<compile_context>
chip_gen: v5e
topology: v5e:2x2
jax: 0.10.0
libtpu: 0.0.40
codegen_flags: <defaults>
</compile_context>

<pallas_src>
import functools

import jax
import jax.numpy as jnp
from jax.experimental import pallas as pl
from jax.experimental.pallas import tpu as pltpu


def _round_up(x, m):
    return ((x + m - 1) // m) * m


def _cdiv(a, b):
    return (a + b - 1) // b


# ----------------------------------------------------------------------------
# Kernels (transposed layout: features on sublanes, points on lanes)
# ----------------------------------------------------------------------------
def _mlp_tail(h1, w2_ref, b2_ref, wh_ref, bh_ref, out_ref, y_dim):
    """Layer 2 + fused (mu | sigma) head. h1: (hid, tn) f32."""
    h2 = jnp.dot(w2_ref[...], h1.astype(w2_ref.dtype),
                 preferred_element_type=jnp.float32) + b2_ref[...]
    h2 = jnp.maximum(h2, 0.0)
    head = jnp.dot(wh_ref[...], h2.astype(wh_ref.dtype),
                   preferred_element_type=jnp.float32) + bh_ref[...]   # (2*y_dim, tn)

    if y_dim % 8 == 0:
        # Sublane-aligned split: transcendentals only on the sigma rows.
        out_ref[:y_dim, :] = head[:y_dim, :].astype(out_ref.dtype)
        out_ref[y_dim:, :] = (
            0.1 + 0.9 * jnp.logaddexp(head[y_dim:, :], 0.0)).astype(out_ref.dtype)
    else:
        row = jax.lax.broadcasted_iota(jnp.int32, head.shape, 0)
        sigma = 0.1 + 0.9 * jnp.logaddexp(head, 0.0)   # softplus on the EUP
        out_ref[...] = jnp.where(row < y_dim, head, sigma).astype(out_ref.dtype)


def _decoder_kernel_task_r(x_ref, rproj_ref, w1x_ref, w2_ref, b2_ref,
                           wh_ref, bh_ref, out_ref, *, y_dim):
    # x_ref: (x_dim, tn); rproj_ref: (hid, 1) f32 — already r @ W1r + b1.
    h1 = jnp.dot(w1x_ref[...], x_ref[...], preferred_element_type=jnp.float32)
    h1 = jnp.maximum(h1 + rproj_ref[...], 0.0)
    _mlp_tail(h1, w2_ref, b2_ref, wh_ref, bh_ref, out_ref, y_dim)


def _decoder_kernel_point_r(x_ref, r_ref, w1x_ref, w1r_ref, b1_ref, w2_ref,
                            b2_ref, wh_ref, bh_ref, out_ref, *, y_dim):
    # x_ref: (x_dim, tn); r_ref: (r_dim, tn) — raw r streamed, projected on MXU.
    h1 = jnp.dot(w1x_ref[...], x_ref[...], preferred_element_type=jnp.float32)
    h1 = h1 + jnp.dot(w1r_ref[...], r_ref[...], preferred_element_type=jnp.float32)
    h1 = jnp.maximum(h1 + b1_ref[...], 0.0)
    _mlp_tail(h1, w2_ref, b2_ref, wh_ref, bh_ref, out_ref, y_dim)


# ----------------------------------------------------------------------------
# Wrapper
# ----------------------------------------------------------------------------
def decoder_forward(x, r, params, *, y_dim, tn=512, compute_dtype=jnp.bfloat16):
    """x: (B, N, x_dim); r: (B, r_dim) or (B, N, r_dim). Returns (mu, sigma)."""
    B, N, x_dim = x.shape
    w1, b1, w2, b2, wmu, bmu, wsig, bsig = params
    hid = w1.shape[1]
    r_dim = w1.shape[0] - x_dim
    out_dim = 2 * y_dim
    per_point_r = (r.ndim == 3)
    f32 = jnp.float32

    # Point-axis tile: multiple of 128 (it is the lane axis + the MXU N dim).
    tn = max(128, _round_up(min(int(tn), _round_up(N, 128)), 128))
    # v7x has 2 TensorCores: keep >= 2 parallel grid units when possible.
    if B * _cdiv(N, tn) < 2 and N > 128:
        tn = max(128, _round_up(_cdiv(N, 2), 128))
    n_tiles = _cdiv(N, tn)
    n_pad = n_tiles * tn

    # Pre-transposed ("feature-major") weights.
    w1x_t = jnp.asarray(w1[:x_dim].T, compute_dtype)                  # (hid, x_dim)
    w1r = w1[x_dim:]                                                  # (r_dim, hid)
    w2_t = jnp.asarray(w2.T, compute_dtype)                           # (hid, hid)
    wh_t = jnp.asarray(jnp.concatenate([wmu, wsig], axis=1).T, compute_dtype)
    b1_t = jnp.asarray(b1, f32).reshape(hid, 1)
    b2_t = jnp.asarray(b2, f32).reshape(hid, 1)
    bh_t = jnp.asarray(jnp.concatenate([bmu, bsig], axis=1), f32).reshape(out_dim, 1)

    # x as (B, x_dim, n_pad): point axis lane-dense, zero-padded tail.
    x_t = jnp.swapaxes(x, 1, 2)
    if n_pad != N:
        x_t = jnp.pad(x_t, ((0, 0), (0, 0), (0, n_pad - N)))
    x_t = x_t.astype(compute_dtype)

    # Constant weights/biases: whole array resident in VMEM (single copy).
    vmem_full = pl.BlockSpec(memory_space=pltpu.MemorySpace.VMEM)
    x_spec = pl.BlockSpec((None, x_dim, tn), lambda b, j: (b, 0, j))
    out_spec = pl.BlockSpec((None, out_dim, tn), lambda b, j: (b, 0, j))

    flops = 2 * B * n_pad * hid * (x_dim + hid + out_dim)
    transcendentals = 2 * B * n_pad * out_dim

    if per_point_r:
        r_t = jnp.swapaxes(r, 1, 2)                                   # (B, r_dim, N)
        if n_pad != N:
            r_t = jnp.pad(r_t, ((0, 0), (0, 0), (0, n_pad - N)))
        r_t = r_t.astype(compute_dtype)
        w1r_t = jnp.asarray(w1r.T, compute_dtype)                     # (hid, r_dim)
        kernel = functools.partial(_decoder_kernel_point_r, y_dim=y_dim)
        operands = (x_t, r_t, w1x_t, w1r_t, b1_t, w2_t, b2_t, wh_t, bh_t)
        in_specs = [
            x_spec,
            pl.BlockSpec((None, r_dim, tn), lambda b, j: (b, 0, j)),
            vmem_full, vmem_full, vmem_full, vmem_full, vmem_full,
            vmem_full, vmem_full,
        ]
        flops += 2 * B * n_pad * r_dim * hid
    else:
        # Per-task r: tiny (B, hid) projection (b1 folded in) done once in f32;
        # the broadcast (B, N, hid) never hits HBM.
        rproj = (r.astype(f32) @ w1r.astype(f32) + b1.astype(f32).reshape(1, hid))
        rproj = rproj[..., None]                                      # (B, hid, 1)
        kernel = functools.partial(_decoder_kernel_task_r, y_dim=y_dim)
        operands = (x_t, rproj, w1x_t, w2_t, b2_t, wh_t, bh_t)
        in_specs = [
            x_spec,
            pl.BlockSpec((None, hid, 1), lambda b, j: (b, 0, 0)),
            vmem_full, vmem_full, vmem_full, vmem_full, vmem_full,
        ]

    bytes_accessed = int(sum(int(a.size) * a.dtype.itemsize for a in operands)
                         + B * n_pad * out_dim * 4)

    out = pl.pallas_call(
        kernel,
        out_shape=jax.ShapeDtypeStruct((B, out_dim, n_pad), jnp.float32),
        grid_spec=pltpu.PrefetchScalarGridSpec(
            num_scalar_prefetch=0,
            grid=(B, n_tiles),
            in_specs=in_specs,
            out_specs=out_spec,
        ),
        compiler_params=pltpu.CompilerParams(
            dimension_semantics=("parallel", "parallel")),
        cost_estimate=pl.CostEstimate(
            flops=int(flops),
            transcendentals=int(transcendentals),
            bytes_accessed=bytes_accessed),
    )(*operands)

    mu = jnp.swapaxes(out[:, :y_dim, :N], 1, 2)
    sigma = jnp.swapaxes(out[:, y_dim:, :N], 1, 2)
    return mu, sigma


# ----------------------------------------------------------------------------
# Init + pure-JAX reference
# ----------------------------------------------------------------------------
def init_decoder_params(key, x_dim, r_dim, y_dim, hidden):
    """Deterministic init mimicking torch.nn.Linear default (uniform +-1/sqrt(fan_in))."""
    in_dim = x_dim + r_dim

    def linear(k, fan_in, fan_out):
        kw, kb = jax.random.split(k)
        bound = 1.0 / jnp.sqrt(fan_in)
        w = jax.random.uniform(kw, (fan_in, fan_out), jnp.float32, -bound, bound)
        b = jax.random.uniform(kb, (1, fan_out), jnp.float32, -bound, bound)
        return w, b

    k1, k2, k3, k4 = jax.random.split(key, 4)
    w1, b1 = linear(k1, in_dim, hidden)
    w2, b2 = linear(k2, hidden, hidden)
    wmu, bmu = linear(k3, hidden, y_dim)
    wsig, bsig = linear(k4, hidden, y_dim)
    return (w1, b1, w2, b2, wmu, bmu, wsig, bsig)


def reference_forward(x, r, params, y_dim):
    """Pure-JAX f32 reference for sanity checking."""
    B, N, _ = x.shape
    if r.ndim == 2:
        r = jnp.broadcast_to(r[:, None, :], (B, N, r.shape[-1]))
    h = jnp.concatenate([x, r], axis=-1).reshape(B * N, -1)
    w1, b1, w2, b2, wmu, bmu, wsig, bsig = params
    h1 = jax.nn.relu(h @ w1 + b1)
    h2 = jax.nn.relu(h1 @ w2 + b2)
    mu = h2 @ wmu + bmu
    sigma = 0.1 + 0.9 * jax.nn.softplus(h2 @ wsig + bsig)
    return mu.reshape(B, N, y_dim), sigma.reshape(B, N, y_dim)


# ----------------------------------------------------------------------------
# Demo / self-check
# ----------------------------------------------------------------------------
if __name__ == "__main__":
    B, N = 2, 13            # N not a multiple of 128 → exercises cdiv + padding
    x_dim, r_dim, y_dim = 2, 32, 1
    hidden = 32

    key = jax.random.PRNGKey(0)
    kx, kr, kr3, kp = jax.random.split(key, 4)
    x = jax.random.normal(kx, (B, N, x_dim), jnp.float32)
    r_task = jax.random.normal(kr, (B, r_dim), jnp.float32)        # per-task r
    r_point = jax.random.normal(kr3, (B, N, r_dim), jnp.float32)   # per-point r
    params = init_decoder_params(kp, x_dim, r_dim, y_dim, hidden)

    fwd_f32 = jax.jit(functools.partial(decoder_forward, y_dim=y_dim,
                                        compute_dtype=jnp.float32))
    fwd_bf16 = jax.jit(functools.partial(decoder_forward, y_dim=y_dim))

    for r in (r_task, r_point):
        mu_ref, sigma_ref = reference_forward(x, r, params, y_dim)

        # f32 compute path: tight numerical check.
        mu32, sig32 = jax.block_until_ready(fwd_f32(x, r, params))
        assert mu32.shape == (B, N, y_dim) and sig32.shape == (B, N, y_dim)
        assert jnp.allclose(mu32, mu_ref, atol=1e-4, rtol=1e-4)
        assert jnp.allclose(sig32, sigma_ref, atol=1e-4, rtol=1e-4)

        # bf16 compute path (default): halved HBM traffic, f32 accumulation.
        mu16, sig16 = jax.block_until_ready(fwd_bf16(x, r, params))
        assert mu16.shape == (B, N, y_dim) and sig16.shape == (B, N, y_dim)
        assert jnp.allclose(mu16, mu_ref, atol=5e-2, rtol=5e-2)
        assert jnp.allclose(sig16, sigma_ref, atol=5e-2, rtol=5e-2)

    print("KERNEL_OK")
</pallas_src>

<mosaic_0001>
module attributes {stable_mosaic.version = 11 : i64} {
  func.func @_decoder_kernel_task_r(%arg0: i32, %arg1: i32, %arg2: memref<1x2x128xf32, #tpu.memory_space<vmem>>, %arg3: memref<1x32x1xf32, #tpu.memory_space<vmem>>, %arg4: memref<32x2xf32, #tpu.memory_space<vmem>>, %arg5: memref<32x32xf32, #tpu.memory_space<vmem>>, %arg6: memref<32x1xf32, #tpu.memory_space<vmem>>, %arg7: memref<2x32xf32, #tpu.memory_space<vmem>>, %arg8: memref<2x1xf32, #tpu.memory_space<vmem>>, %arg9: memref<1x2x128xf32, #tpu.memory_space<vmem>>) attributes {dimension_semantics = [#tpu.dimension_semantics<parallel>, #tpu.dimension_semantics<parallel>], iteration_bounds = array<i64: 2, 1>, scalar_prefetch = 0 : i64, scratch_operands = 0 : i64, tpu.core_type = #tpu.core_type<tc>, window_params = [{transform_indices = @transform_0, window_bounds = array<i64: 1, 2, 128>}, {transform_indices = @transform_1, window_bounds = array<i64: 1, 32, 1>}, {pipeline_mode = #tpu.pipeline_mode<synchronous>, transform_indices = @transform_2, window_bounds = array<i64: 32, 2>}, {pipeline_mode = #tpu.pipeline_mode<synchronous>, transform_indices = @transform_3, window_bounds = array<i64: 32, 32>}, {pipeline_mode = #tpu.pipeline_mode<synchronous>, transform_indices = @transform_4, window_bounds = array<i64: 32, 1>}, {pipeline_mode = #tpu.pipeline_mode<synchronous>, transform_indices = @transform_5, window_bounds = array<i64: 2, 32>}, {pipeline_mode = #tpu.pipeline_mode<synchronous>, transform_indices = @transform_6, window_bounds = array<i64: 2, 1>}, {transform_indices = @transform_7, window_bounds = array<i64: 1, 2, 128>}]} {
    %c0 = arith.constant 0 : index
    %c0_0 = arith.constant 0 : index
    %0 = vector.load %arg4[%c0, %c0_0] : memref<32x2xf32, #tpu.memory_space<vmem>>, vector<32x2xf32>
    %c0_1 = arith.constant 0 : index
    %c0_2 = arith.constant 0 : index
    %c0_3 = arith.constant 0 : index
    %1 = vector.load %arg2[%c0_1, %c0_2, %c0_3] : memref<1x2x128xf32, #tpu.memory_space<vmem>>, vector<1x2x128xf32>
    %2 = vector.shape_cast %1 : vector<1x2x128xf32> to vector<2x128xf32>
    %cst = arith.constant dense<0.000000e+00> : vector<32x128xf32>
    %3 = tpu.matmul %0, %2, %cst {dimension_numbers = #tpu.dot_dimension_numbers<[1], [0], [0], [1], [0, 0, 1, 1], [], []>} : vector<32x2xf32>, vector<2x128xf32>, vector<32x128xf32> -> vector<32x128xf32>
    %c0_4 = arith.constant 0 : index
    %c0_5 = arith.constant 0 : index
    %c0_6 = arith.constant 0 : index
    %4 = vector.load %arg3[%c0_4, %c0_5, %c0_6] : memref<1x32x1xf32, #tpu.memory_space<vmem>>, vector<1x32x1xf32>
    %5 = vector.shape_cast %4 : vector<1x32x1xf32> to vector<32x1xf32>
    %6 = vector.broadcast %5 : vector<32x1xf32> to vector<32x128xf32>
    %7 = arith.addf %3, %6 : vector<32x128xf32>
    %cst_7 = arith.constant 0.000000e+00 : f32
    %8 = vector.broadcast %cst_7 : f32 to vector<32x128xf32>
    %9 = arith.maximumf %7, %8 : vector<32x128xf32>
    %c0_8 = arith.constant 0 : index
    %c0_9 = arith.constant 0 : index
    %10 = vector.load %arg5[%c0_8, %c0_9] : memref<32x32xf32, #tpu.memory_space<vmem>>, vector<32x32xf32>
    %cst_10 = arith.constant dense<0.000000e+00> : vector<32x128xf32>
    %11 = tpu.matmul %10, %9, %cst_10 {dimension_numbers = #tpu.dot_dimension_numbers<[1], [0], [0], [1], [0, 0, 1, 1], [], []>} : vector<32x32xf32>, vector<32x128xf32>, vector<32x128xf32> -> vector<32x128xf32>
    %c0_11 = arith.constant 0 : index
    %c0_12 = arith.constant 0 : index
    %12 = vector.load %arg6[%c0_11, %c0_12] : memref<32x1xf32, #tpu.memory_space<vmem>>, vector<32x1xf32>
    %13 = vector.broadcast %12 : vector<32x1xf32> to vector<32x128xf32>
    %14 = arith.addf %11, %13 : vector<32x128xf32>
    %cst_13 = arith.constant 0.000000e+00 : f32
    %15 = vector.broadcast %cst_13 : f32 to vector<32x128xf32>
    %16 = arith.maximumf %14, %15 : vector<32x128xf32>
    %c0_14 = arith.constant 0 : index
    %c0_15 = arith.constant 0 : index
    %17 = vector.load %arg7[%c0_14, %c0_15] : memref<2x32xf32, #tpu.memory_space<vmem>>, vector<2x32xf32>
    %cst_16 = arith.constant dense<0.000000e+00> : vector<2x128xf32>
    %18 = tpu.matmul %17, %16, %cst_16 {dimension_numbers = #tpu.dot_dimension_numbers<[1], [0], [0], [1], [0, 0, 1, 1], [], []>} : vector<2x32xf32>, vector<32x128xf32>, vector<2x128xf32> -> vector<2x128xf32>
    %c0_17 = arith.constant 0 : index
    %c0_18 = arith.constant 0 : index
    %19 = vector.load %arg8[%c0_17, %c0_18] : memref<2x1xf32, #tpu.memory_space<vmem>>, vector<2x1xf32>
    %20 = vector.broadcast %19 : vector<2x1xf32> to vector<2x128xf32>
    %21 = arith.addf %18, %20 : vector<2x128xf32>
    %22 = tpu.iota {dimensions = array<i32: 0>} : vector<2x128xi32>
    %cst_19 = arith.constant 0.000000e+00 : f32
    %23 = vector.broadcast %cst_19 : f32 to vector<2x128xf32>
    %24 = arith.maximumf %21, %23 : vector<2x128xf32>
    %25 = vector.broadcast %cst_19 : f32 to vector<2x128xf32>
    %26 = arith.subf %21, %25 : vector<2x128xf32>
    %27 = arith.cmpf one, %26, %26 : vector<2x128xf32>
    %28 = vector.broadcast %cst_19 : f32 to vector<2x128xf32>
    %29 = arith.addf %21, %28 : vector<2x128xf32>
    %30 = math.absf %26 : vector<2x128xf32>
    %cst_20 = arith.constant 0.000000e+00 : f32
    %31 = vector.broadcast %cst_20 : f32 to vector<2x128xf32>
    %32 = arith.subf %31, %30 : vector<2x128xf32>
    %33 = math.exp %32 : vector<2x128xf32>
    %34 = math.log1p %33 : vector<2x128xf32>
    %35 = arith.addf %24, %34 : vector<2x128xf32>
    %36 = arith.select %27, %29, %35 : vector<2x128xi1>, vector<2x128xf32>
    %cst_21 = arith.constant 0.899999976 : f32
    %37 = vector.broadcast %cst_21 : f32 to vector<2x128xf32>
    %38 = arith.mulf %37, %36 : vector<2x128xf32>
    %cst_22 = arith.constant 1.000000e-01 : f32
    %39 = vector.broadcast %cst_22 : f32 to vector<2x128xf32>
    %40 = arith.addf %39, %38 : vector<2x128xf32>
    %c1_i32 = arith.constant 1 : i32
    %41 = vector.broadcast %c1_i32 : i32 to vector<2x128xi32>
    %42 = arith.cmpi slt, %22, %41 : vector<2x128xi32>
    %43 = arith.select %42, %21, %40 : vector<2x128xi1>, vector<2x128xf32>
    %c0_23 = arith.constant 0 : index
    %c0_24 = arith.constant 0 : index
    %c0_25 = arith.constant 0 : index
    %44 = vector.load %arg9[%c0_23, %c0_24, %c0_25] : memref<1x2x128xf32, #tpu.memory_space<vmem>>, vector<1x2x128xf32>
    %45 = vector.shape_cast %44 : vector<1x2x128xf32> to vector<2x128xf32>
    %46 = vector.shape_cast %43 : vector<2x128xf32> to vector<1x2x128xf32>
    tpu.vector_store %arg9[%c0_23, %c0_24, %c0_25], %46 {strides = array<i32>} : memref<1x2x128xf32, #tpu.memory_space<vmem>>, vector<1x2x128xf32>,
    return
  }
  func.func @transform_0(%arg0: i32, %arg1: i32) -> (i32, i32, i32) {
    %c0_i32 = arith.constant 0 : i32
    %c0_i32_0 = arith.constant 0 : i32
    return %arg0, %c0_i32, %arg1 : i32, i32, i32
  }
  func.func @transform_1(%arg0: i32, %arg1: i32) -> (i32, i32, i32) {
    %c0_i32 = arith.constant 0 : i32
    %c0_i32_0 = arith.constant 0 : i32
    %c0_i32_1 = arith.constant 0 : i32
    return %arg0, %c0_i32, %c0_i32_0 : i32, i32, i32
  }
  func.func @transform_2(%arg0: i32, %arg1: i32) -> (i32, i32) {
    %c0_i32 = arith.constant 0 : i32
    %c0_i32_0 = arith.constant 0 : i32
    %c0_i32_1 = arith.constant 0 : i32
    return %c0_i32, %c0_i32_0 : i32, i32
  }
  func.func @transform_3(%arg0: i32, %arg1: i32) -> (i32, i32) {
    %c0_i32 = arith.constant 0 : i32
    %c0_i32_0 = arith.constant 0 : i32
    %c0_i32_1 = arith.constant 0 : i32
    return %c0_i32, %c0_i32_0 : i32, i32
  }
  func.func @transform_4(%arg0: i32, %arg1: i32) -> (i32, i32) {
    %c0_i32 = arith.constant 0 : i32
    %c0_i32_0 = arith.constant 0 : i32
    %c0_i32_1 = arith.constant 0 : i32
    return %c0_i32, %c0_i32_0 : i32, i32
  }
  func.func @transform_5(%arg0: i32, %arg1: i32) -> (i32, i32) {
    %c0_i32 = arith.constant 0 : i32
    %c0_i32_0 = arith.constant 0 : i32
    %c0_i32_1 = arith.constant 0 : i32
    return %c0_i32, %c0_i32_0 : i32, i32
  }
  func.func @transform_6(%arg0: i32, %arg1: i32) -> (i32, i32) {
    %c0_i32 = arith.constant 0 : i32
    %c0_i32_0 = arith.constant 0 : i32
    %c0_i32_1 = arith.constant 0 : i32
    return %c0_i32, %c0_i32_0 : i32, i32
  }
  func.func @transform_7(%arg0: i32, %arg1: i32) -> (i32, i32, i32) {
    %c0_i32 = arith.constant 0 : i32
    %c0_i32_0 = arith.constant 0 : i32
    return %arg0, %c0_i32, %arg1 : i32, i32, i32
  }
}

</mosaic_0001>

<bundles_post_ra>
// kernel: decoder_forward.1
= control target key start
LH: loop header
LB: loop body
LE: loop exit
PB: predicated region body
PF: predicated region fallthrough
CT: control target
= control target key end

     0   :  { %s743_s24 = smov 0   ;;  %s745_s25 = smov 0   ;;  %s838_s0 = inlined_call_operand.vmem [shape: f32[2,2,128], index: 0, kind: input, shape index: {}]   ;;  %s839_s1 = inlined_call_operand.vmem [shape: f32[2,32,1], index: 1, kind: input, shape index: {}]   ;;  %s840_s2 = inlined_call_operand.vmem [shape: f32[32,2], index: 2, kind: input, shape index: {}]   ;;  %s841_s3 = inlined_call_operand.vmem [shape: f32[32,32], index: 3, kind: input, shape index: {}]   ;;  %s842_s4 = inlined_call_operand.vmem [shape: f32[32,1], index: 4, kind: input, shape index: {}]   ;;  %s843_s5 = inlined_call_operand.vmem [shape: f32[2,32], index: 5, kind: input, shape index: {}]   ;;  %s844_s6 = inlined_call_operand.vmem [shape: f32[2,1], index: 6, kind: input, shape index: {}]   ;;  %s845_s7 = inlined_call_operand.vmem [shape: f32[2,2,128], index: 7, kind: output, shape index: {}]  }
   0x1   :  { %s747_s26 = smov 0  }
   0x2 LB: > { %s29_s27 = sadd.s32 1, %s696_s25  ;;  %p623_p0 = scmp.ge.s32.totalorder %s700_s26, 1  ;;  %s700_s26 = sphi %s747_s26, %s17_s26   ;;  %s696_s25 = sphi %s745_s25, %s847_s25   ;;  %s692_s24 = sphi %s743_s24, %s846_s24  }
   0x3   : > { %p31_p1 = scmp.ge.s32.totalorder %s29_s27, 2  ;;  %p265_p2 = scmp.lt.s32.totalorder %s700_s26, 3 }
   0x5   : > { %s849_s27 = smov (%p31_p1, %s29_s27), 0  ;;  %p266_p3 = pnand %p623_p0, %p265_p2 }
   0x6   : > { %p306_p4 = scmp.lt.s32.totalorder (!%p266_p3), %s692_s24, 1 }
   0x7   : > { %269 = sbr.rel (%p266_p3) target bundleno = 487 (0x1e7), region = 48 }
   0xc   : > { %v702_v0 = vmov 0   ;;  %s851_s24 = smov (!%p306_p4, %s692_s24), 1  ;;  %vm367_vm0 = vcmask 1041408   ;;  %v325_v1 = vld [vmem:[%s840_s2] sm:$0xff]  ;;  %vm354_vm1 = vcmask 15360   ;;  %v328_v2 = vld [vmem:[%s840_s2 + $0x18] sm:$0xff] }
   0xd   : > { %672 = vset.pattern.permute.xlu1 %v702_v0  ;;  %671 = vset.pattern.permute.xlu0 %v702_v0  ;;  %s624_s28 = sshll.u32 %s851_s24, 1  ;;  %s640_s29 = sshll.u32 %s851_s24, 5  ;;  %v326_v6 = vld [vmem:[%s840_s2 + $0x8] sm:$0xff]  ;;  %v327_v9 = vld [vmem:[%s840_s2 + $0x10] sm:$0xff]  ;;  %v408_v11 = vld [vmem:[%s842_s4] sm:$0xff]  ;;  %vm432_vm2 = vcmask 261120  }
   0xe   : > { %673 = vset.pattern.permute.xlu2 %v702_v0  ;;  %s312_s9 = scalar_lea.vmem %s838_s0, %s624_s28  ;;  %s317_s16 = scalar_lea.vmem %s839_s1, %s640_s29  ;;  %v409_v10 = vld [vmem:[%s842_s4 + $0x8] sm:$0xff]  ;;  %v411_v13 = vld [vmem:[%s842_s4 + $0x18] sm:$0xff]  ;;  %v410_v20 = vld [vmem:[%s842_s4 + $0x10] sm:$0xff]  ;;  %v508_v0 = vlaneseq }
   0xf   : > { %v329_v3 = vld [vmem:[%s312_s9] sm:$0x3]  ;;  %v333_v4 = vld [vmem:[%s317_s16 + $0x18] sm:$0xff]  ;;  %v331_v5 = vld [vmem:[%s317_s16 + $0x8] sm:$0xff]  ;;  %429 = vperm.xlu2 %673, %v411_v13   ;;  %s324_s30 = scalar_lea.vmem %s845_s7, %s624_s28 }
  0x10   : > { %628 = vmatpush.msk.msra.mxu0 %vm367_vm0, %v329_v3  ;;  %641 = vmatpush.msk.msra.mxu2 %vm367_vm0, %v329_v3  ;;  %v332_v7 = vld [vmem:[%s317_s16 + $0x10] sm:$0xff]  ;;  %v330_v8 = vld [vmem:[%s317_s16] sm:$0xff]  ;;  %v405_v33 = vld [vmem:[%s841_s3 + $0x8] sm:$0xff] }
  0x11   : > { %629 = vmatmul.msk.f32.vlgmr.msra.gmra.mxu0 %vm354_vm1, %v325_v1  ;;  %632 = vmatmul.msk.f32.vlgmr.msra.gmra.mxu2 %vm354_vm1, %v328_v2  ;;  %v479_v26 = vld [vmem:[%s844_s6] sm:$0x3]  ;;  %v406_v32 = vld [vmem:[%s841_s3 + $0x10] sm:$0xff]  ;;  %v407_v34 = vld [vmem:[%s841_s3 + $0x18] sm:$0xff] }
  0x12   : > { %351 = vperm.xlu0 %671, %v333_v4   ;;  %341 = vperm.xlu1 %672, %v331_v5   ;;  %v404_v31 = vld [vmem:[%s841_s3] sm:$0xff]  ;;  %v509_v5 = vshrl.u32 %v508_v0, 7 }
  0x13   : > { %v478_v51 = vld [vmem:[%s843_s5] sm:$0x3] }
  0x14   : > { %vm530_vm5 = vcmp.lt.s32.totalorder %v509_v5, 1 }
  0x17   : > { %424 = vperm.xlu2 %673, %v410_v20  }
  0x19   : > { %630 = vmatmul.msk.f32.gmra.mxu0 %vm354_vm1, %v326_v6 }
  0x1a   : > { %346 = vperm.xlu0 %671, %v332_v7   ;;  %336 = vperm.xlu1 %672, %v330_v8  }
  0x1f   : > { %482 = vperm.xlu2 %673, %v479_v26  }
  0x21   : > { %631 = vmatmul.msk.f32.gmra.mxu0 %vm354_vm1, %v327_v9 }
  0x22   : > { %419 = vperm.xlu0 %671, %v409_v10   ;;  %414 = vperm.xlu1 %672, %v408_v11  }
  0x69   : > { %v430_v35 = vpop.permute.xlu2 %429 }
  0x71   : > { %v425_v38 = vpop.permute.xlu2 %424 }
  0x79   : > { %v483_v52 = vpop.permute.xlu2 %482 }
  0x84   : > { %v352_v14 = vpop.permute.xlu0 %351  ;;  %v342_v15 = vpop.permute.xlu1 %341 }
  0x8c   : > { %v347_v21 = vpop.permute.xlu0 %346  ;;  %v337_v22 = vpop.permute.xlu1 %336 }
  0x8e   : > { %v388_v12 = vpop.f32.mrf.mxu0 }
  0x8f   : > { %v389_v27 = vadd.f32 %v388_v12, %v337_v22 }
  0x91   : > { %v400_v30 = vmax.f32 %v389_v27, 0.0 }
  0x94   : > { %v397_v16 = vpop.f32.mrf.mxu2  ;;  %v420_v43 = vpop.permute.xlu0 %419 }
  0x95   : > { %v398_v17 = vadd.f32 %v397_v16, %v352_v14  ;;  %v415_v46 = vpop.permute.xlu1 %414 }
  0x96   : > { %v391_v18 = vpop.f32.mrf.mxu0 }
  0x97   : > { %v403_v19 = vmax.f32 %v398_v17, 0.0  ;;  %v392_v24 = vadd.f32 %v391_v18, %v342_v15 }
  0x99   : > { %457 = vmatpush.msra.mxu1 %v403_v19  ;;  %642 = vmatpush.msra.mxu3 %v403_v19  ;;  %v401_v29 = vmax.f32 %v392_v24, 0.0 }
  0x9e   : > { %v394_v23 = vpop.f32.mrf.mxu0 }
  0x9f   : > { %v395_v25 = vadd.f32 %v394_v23, %v347_v21 }
  0xa1   : > { %v402_v28 = vmax.f32 %v395_v25, 0.0 }
  0xa3   : > { %458 = vmatpush.msra.mxu1 %v402_v28  ;;  %643 = vmatpush.msra.mxu3 %v402_v28 }
  0xa5   : > { %459 = vmatpush.msra.mxu1 %v401_v29  ;;  %644 = vmatpush.msra.mxu3 %v401_v29 }
  0xa7   : > { %460 = vmatpush.msra.mxu1 %v400_v30  ;;  %645 = vmatpush.msra.mxu3 %v400_v30 }
  0xa8   : > { %633 = vmatmul.msk.f32.vlgmr.msra.gmra.mxu1 %vm432_vm2, %v404_v31  ;;  %635 = vmatmul.msk.f32.vlgmr.msra.gmra.mxu3 %vm432_vm2, %v406_v32 }
  0xb0   : > { %634 = vmatmul.msk.f32.gmra.mxu1 %vm432_vm2, %v405_v33  ;;  %636 = vmatmul.msk.f32.gmra.mxu3 %vm432_vm2, %v407_v34 }
 0x125   : > { %v462_v36 = vpop.f32.mrf.mxu1 }
 0x126   : > { %v463_v47 = vadd.f32 %v462_v36, %v415_v46 }
 0x128   : > { %v474_v50 = vmax.f32 %v463_v47, 0.0 }
 0x12b   : > { %v468_v37 = vpop.f32.mrf.mxu3 }
 0x12c   : > { %v469_v41 = vadd.f32 %v468_v37, %v425_v38 }
 0x12d   : > { %v465_v39 = vpop.f32.mrf.mxu1 }
 0x12e   : > { %v466_v44 = vadd.f32 %v465_v39, %v420_v43  ;;  %v476_v48 = vmax.f32 %v469_v41, 0.0 }
 0x130   : > { %v475_v49 = vmax.f32 %v466_v44, 0.0 }
 0x133   : > { %v471_v40 = vpop.f32.mrf.mxu3 }
 0x134   : > { %v472_v42 = vadd.f32 %v471_v40, %v430_v35 }
 0x136   : > { %v477_v45 = vmax.f32 %v472_v42, 0.0 }
 0x138   : > { %500 = vmatpush.msrb.mxu2 %v477_v45 }
 0x13a   : > { %501 = vmatpush.msrb.mxu2 %v476_v48 }
 0x13c   : > { %502 = vmatpush.msrb.mxu2 %v475_v49 }
 0x13e   : > { %503 = vmatpush.msrb.mxu2 %v474_v50 }
 0x13f   : > { %637 = vmatmul.msk.f32.vlgmr.msrb.gmra.mxu2 %vm432_vm2, %v478_v51 }
 0x1c2   : > { %v505_v53 = vpop.f32.mrf.mxu2 }
 0x1c3   : > { %v506_v54 = vadd.f32 %v505_v53, %v483_v52 }
 0x1c5   : > { %v513_v55 = vand.u32 2147483647, %v506_v54  ;;  %v510_v3 = vmax.f32 %v506_v54, 0.0  ;;  %vm511_vm4 = vcmp.ne.f32.partialorder %v506_v54, %v506_v54 }
 0x1c7   : > { %v514_v56 = vsub.f32 0.0, %v513_v55 }
 0x1c9   : > { %v515_v57 = vmul.f32 1.442695, %v514_v56 }
 0x1cb   : > { %674 = vpow2.f32 %v515_v57 }
 0x1d1   : > { %v675_v58 = vpop.eup %674 }
 0x1d2   : > { %v517_v59 = vadd.f32 1.0, %v675_v58  ;;  %v520_v60 = vmul.f32 -0.5, %v675_v58  ;;  %v523_v62 = vand.u32 2147483647, %v675_v58 }
 0x1d4   : > { %676 = vlog2.f32 %v517_v59  ;;  %v521_v61 = vadd.f32 1.0, %v520_v60  ;;  %vm524_vm3 = vcmp.lt.f32.partialorder %v523_v62, 0.0004427343 }
 0x1d6   : > { %v522_v2 = vmul.f32 %v675_v58, %v521_v61 }
 0x1da   : > { %v677_v63 = vpop.eup %676 }
 0x1db   : > { %v519_v1 = vmul.f32 0.6931472, %v677_v63 }
 0x1dd   : > { %v525_v4 = vsel %vm524_vm3, %v522_v2, %v519_v1 }
 0x1de   : > { %v526_v6 = vadd.f32 %v525_v4, %v510_v3 }
 0x1e0   : > { %v527_v7 = vsel %vm511_vm4, %v506_v54, %v526_v6 }
 0x1e1   : > { %v528_v8 = vmul.f32 0.9, %v527_v7 }
 0x1e3   : > { %v529_v9 = vadd.f32 0.1, %v528_v8 }
 0x1e5   : > { %v531_v10 = vsel %vm530_vm5, %v506_v54, %v529_v9 }
 0x1e6   : > { %532 = vst [vmem:[%s324_s30] sm:$0x3] %v531_v10 }
 0x1e7 PF: > { %s17_s26 = sadd.s32 1, %s700_s26   ;;  %s846_s24 = smov %s696_s25 }
 0x1e8   : > { %p14_p5 = scmp.ge.s32.totalorder %s17_s26, 4   ;;  %s847_s25 = smov %s849_s27 }
 0x1ea   :  { %16 = sbr.rel (!%p14_p5) target bundleno = 2 (0x2), region = 81 }

</bundles_post_ra>
